<compile_context>
chip_gen: v7x
topology: tpu7x:2x2x1
jax: 0.10.0
libtpu: 0.0.40
codegen_flags: <defaults>
</compile_context>

<pallas_src>
import math

import jax
import jax.numpy as jnp
from jax.experimental import pallas as pl
from jax.experimental.pallas import tpu as pltpu


# ---------------------------------------------------------------------------
# Tiling helpers
# ---------------------------------------------------------------------------
_LANE = 128


def _round_up(x, m):
    return ((x + m - 1) // m) * m


def _choose_tile(dim, max_tile, align):
    """Largest multiple of `align` that divides `dim` and is <= max_tile,
    or `dim` itself when it is already small enough."""
    if dim <= max_tile:
        return dim
    t = (max_tile // align) * align
    while t >= align:
        if dim % t == 0:
            return t
        t -= align
    return dim


def gmu_tiles(in_dim, hidden_dim, max_tn=512, max_tk=512):
    """Returns (Hp, tn, tk): padded hidden dim, hidden tile, reduction tile."""
    Hp = _round_up(hidden_dim, _LANE)
    tn = _choose_tile(Hp, max_tn, _LANE)
    tk = _choose_tile(in_dim, max_tk, _LANE)
    return Hp, tn, tk


# ---------------------------------------------------------------------------
# One-time parameter preprocessing (hoisted out of the per-call path)
# ---------------------------------------------------------------------------
def prepare_gmu_params(w_tanh, b_tanh, w_gate, b_gate, *, max_tn=512, max_tk=512):
    """Pad hidden dim to Hp, block-interleave tanh/gate columns per tn-wide tile
    ([tanh_j | gate_j]), cast weights to bf16.  Call once and cache the result;
    the per-inference wrapper then streams only x + the prepared params."""
    M, D, H = w_tanh.shape
    Hp, tn, tk = gmu_tiles(D, H, max_tn, max_tk)
    nb = Hp // tn

    pad_w = ((0, 0), (0, 0), (0, Hp - H))
    pad_b = ((0, 0), (0, Hp - H))
    w_t = jnp.pad(w_tanh, pad_w).reshape(M, D, nb, tn)
    w_g = jnp.pad(w_gate, pad_w).reshape(M, D, nb, tn)
    b_t = jnp.pad(b_tanh, pad_b).reshape(M, nb, tn)
    b_g = jnp.pad(b_gate, pad_b).reshape(M, nb, tn)

    # Block-interleave so one fused matmul per modality still gives lane-aligned
    # tanh/gate halves inside every (B, 2*tn) output tile.
    w_fused = jnp.stack([w_t, w_g], axis=3).reshape(M, D, 2 * Hp).astype(jnp.bfloat16)
    b_fused = (jnp.stack([b_t, b_g], axis=2)
               .reshape(M, 2 * Hp).astype(jnp.float32)[:, None, :])  # (M, 1, 2*Hp)

    meta = dict(hidden_dim=H, Hp=Hp, tn=tn, tk=tk)
    return w_fused, b_fused, meta


# ---------------------------------------------------------------------------
# Kernel
# ---------------------------------------------------------------------------
def gmu_kernel(x_ref, w_ref, b_ref, o_ref, acc_ref):
    """x_ref:   (M, B, tk)     f32   (cast to bf16 in vregs before the dot)
       w_ref:   (M, tk, 2*tn)  bf16  (block-interleaved [tanh_j | gate_j])
       b_ref:   (M, 1, 2*tn)   f32
       o_ref:   (B, tn)        f32
       acc_ref: (M, B, 2*tn)   f32   VMEM scratch, resident across the K axis."""
    k = pl.program_id(1)
    n_modalities = x_ref.shape[0]
    tn = o_ref.shape[-1]

    @pl.when(k == 0)
    def _():
        acc_ref[...] = jnp.zeros_like(acc_ref)

    # M is small & static -> trace-time unroll; the independent per-modality
    # matmuls interleave under the LLO scheduler.
    for m in range(n_modalities):
        xm = x_ref[m].astype(jnp.bfloat16)                       # f32 HBM, bf16 vregs
        acc_ref[m] = acc_ref[m] + jnp.dot(
            xm, w_ref[m], preferred_element_type=jnp.float32)

    @pl.when(k == pl.num_programs(1) - 1)
    def _():
        out = jnp.zeros(o_ref.shape, jnp.float32)
        for m in range(n_modalities):
            z = acc_ref[m] + b_ref[m]                            # (B, 2*tn) + (1, 2*tn)
            h = jnp.tanh(z[:, :tn])                              # lane-aligned slices
            g = jax.nn.sigmoid(z[:, tn:])
            out = out + h * g
        o_ref[...] = out.astype(o_ref.dtype)


# ---------------------------------------------------------------------------
# Per-call wrapper (cheap: no weight work, no x cast)
# ---------------------------------------------------------------------------
def gated_multimodal_unit(x_stacked, w_fused, b_fused, meta):
    """x_stacked: (M, B, D) f32; w_fused/b_fused/meta from prepare_gmu_params.
    Returns fused representation (B, H) f32."""
    M, B, D = x_stacked.shape
    H, Hp, tn, tk = meta["hidden_dim"], meta["Hp"], meta["tn"], meta["tk"]
    n_blocks = Hp // tn
    k_blocks = D // tk

    grid_spec = pltpu.PrefetchScalarGridSpec(
        num_scalar_prefetch=0,
        grid=(n_blocks, k_blocks),            # hidden axis 'parallel', D reduction last
        in_specs=[
            pl.BlockSpec((M, B, tk), lambda j, k: (0, 0, k)),
            pl.BlockSpec((M, tk, 2 * tn), lambda j, k: (0, k, j)),
            pl.BlockSpec((M, 1, 2 * tn), lambda j, k: (0, 0, j)),
        ],
        out_specs=pl.BlockSpec((B, tn), lambda j, k: (0, j)),
        scratch_shapes=[pltpu.VMEM((M, B, 2 * tn), jnp.float32)],
    )

    out_padded = pl.pallas_call(
        gmu_kernel,
        out_shape=jax.ShapeDtypeStruct((B, Hp), jnp.float32),    # explicit f32 output
        grid_spec=grid_spec,
        compiler_params=pltpu.CompilerParams(
            dimension_semantics=("parallel", "arbitrary"),
        ),
    )(x_stacked, w_fused, b_fused)

    return out_padded[:, :H] if Hp != H else out_padded


# ---------------------------------------------------------------------------
# Init / reference / demo
# ---------------------------------------------------------------------------
def init_params(key, n_modalities, in_dim, hidden_dim):
    """Deterministic init mirroring nn.Linear's default uniform(-1/sqrt(D), 1/sqrt(D))."""
    bound = 1.0 / math.sqrt(in_dim)
    ks = jax.random.split(key, 4)
    shape_w = (n_modalities, in_dim, hidden_dim)
    shape_b = (n_modalities, hidden_dim)
    w_tanh = jax.random.uniform(ks[0], shape_w, jnp.float32, -bound, bound)
    b_tanh = jax.random.uniform(ks[1], shape_b, jnp.float32, -bound, bound)
    w_gate = jax.random.uniform(ks[2], shape_w, jnp.float32, -bound, bound)
    b_gate = jax.random.uniform(ks[3], shape_b, jnp.float32, -bound, bound)
    return w_tanh, b_tanh, w_gate, b_gate


def gmu_reference(x_stacked, w_tanh, b_tanh, w_gate, b_gate):
    # Reference with the same bf16 rounding of matmul inputs (f32 accumulation),
    # so the comparison tolerance can stay tight.
    x = x_stacked.astype(jnp.bfloat16).astype(jnp.float32)
    wt = w_tanh.astype(jnp.bfloat16).astype(jnp.float32)
    wg = w_gate.astype(jnp.bfloat16).astype(jnp.float32)
    h = jnp.tanh(jnp.einsum("mbd,mdh->mbh", x, wt) + b_tanh[:, None, :])
    g = jax.nn.sigmoid(jnp.einsum("mbd,mdh->mbh", x, wg) + b_gate[:, None, :])
    return (h * g).sum(axis=0)


if __name__ == "__main__":
    modalities = ["text", "image", "audio"]
    M = len(modalities)
    B, D, H = 8, 32, 64

    key = jax.random.PRNGKey(0)
    k_x, k_p = jax.random.split(key)

    # {modality: tensor(B, D)} built as a stacked (M, B, D) array.
    x_dict = {
        m: jax.random.normal(jax.random.fold_in(k_x, i), (B, D), jnp.float32)
        for i, m in enumerate(modalities)
    }
    x_stacked = jnp.stack([x_dict[m] for m in modalities], axis=0)

    w_tanh, b_tanh, w_gate, b_gate = init_params(k_p, M, D, H)

    # One-time weight prep (cache these for every subsequent call).
    w_fused, b_fused, meta = prepare_gmu_params(w_tanh, b_tanh, w_gate, b_gate)
    w_fused = jax.block_until_ready(w_fused)

    fused = gated_multimodal_unit(x_stacked, w_fused, b_fused, meta)
    fused = jax.block_until_ready(fused)

    ref = gmu_reference(x_stacked, w_tanh, b_tanh, w_gate, b_gate)
    assert fused.shape == (B, H)
    assert fused.dtype == jnp.float32
    assert jnp.allclose(fused, ref, atol=2e-3, rtol=2e-3), (
        float(jnp.max(jnp.abs(fused - ref))))

    print("KERNEL_OK")
</pallas_src>

<mosaic_0001>
module attributes {stable_mosaic.version = 11 : i64} {
  func.func @gmu_kernel(%arg0: i32, %arg1: i32, %arg2: memref<3x8x32xf32, #tpu.memory_space<vmem>>, %arg3: memref<3x32x256xbf16, #tpu.memory_space<vmem>>, %arg4: memref<3x1x256xf32, #tpu.memory_space<vmem>>, %arg5: memref<8x128xf32, #tpu.memory_space<vmem>>, %arg6: memref<3x8x256xf32, #tpu.memory_space<vmem>>) attributes {dimension_semantics = [#tpu.dimension_semantics<parallel>, #tpu.dimension_semantics<arbitrary>], iteration_bounds = array<i64: 1, 1>, scalar_prefetch = 0 : i64, scratch_operands = 1 : i64, tpu.core_type = #tpu.core_type<tc>, window_params = [{transform_indices = @transform_0, window_bounds = array<i64: 3, 8, 32>}, {transform_indices = @transform_1, window_bounds = array<i64: 3, 32, 256>}, {transform_indices = @transform_2, window_bounds = array<i64: 3, 1, 256>}, {transform_indices = @transform_3, window_bounds = array<i64: 8, 128>}]} {
    %c0_i32 = arith.constant 0 : i32
    %0 = arith.cmpi eq, %arg1, %c0_i32 : i32
    %1 = arith.extui %0 : i1 to i32
    %c0_i32_0 = arith.constant 0 : i32
    %2 = arith.cmpi ne, %1, %c0_i32_0 : i32
    scf.if %2 {
      %cst_38 = arith.constant 0.000000e+00 : f32
      %42 = vector.broadcast %cst_38 : f32 to vector<3x8x256xf32>
      %c0_39 = arith.constant 0 : index
      %c0_40 = arith.constant 0 : index
      %c0_41 = arith.constant 0 : index
      %43 = vector.load %arg6[%c0_39, %c0_40, %c0_41] : memref<3x8x256xf32, #tpu.memory_space<vmem>>, vector<3x8x256xf32>
      tpu.vector_store %arg6[%c0_39, %c0_40, %c0_41], %42 {strides = array<i32>} : memref<3x8x256xf32, #tpu.memory_space<vmem>>, vector<3x8x256xf32>,
    } else {
    }
    %c0 = arith.constant 0 : index
    %c0_1 = arith.constant 0 : index
    %c0_2 = arith.constant 0 : index
    %3 = vector.load %arg2[%c0, %c0_1, %c0_2] : memref<3x8x32xf32, #tpu.memory_space<vmem>>, vector<1x8x32xf32>
    %4 = vector.shape_cast %3 : vector<1x8x32xf32> to vector<8x32xf32>
    %5 = arith.truncf %4 : vector<8x32xf32> to vector<8x32xbf16>
    %c0_3 = arith.constant 0 : index
    %c0_4 = arith.constant 0 : index
    %c0_5 = arith.constant 0 : index
    %6 = vector.load %arg6[%c0_3, %c0_4, %c0_5] : memref<3x8x256xf32, #tpu.memory_space<vmem>>, vector<1x8x256xf32>
    %7 = vector.shape_cast %6 : vector<1x8x256xf32> to vector<8x256xf32>
    %c0_6 = arith.constant 0 : index
    %c0_7 = arith.constant 0 : index
    %c0_8 = arith.constant 0 : index
    %8 = vector.load %arg3[%c0_6, %c0_7, %c0_8] : memref<3x32x256xbf16, #tpu.memory_space<vmem>>, vector<1x32x256xbf16>
    %9 = vector.shape_cast %8 : vector<1x32x256xbf16> to vector<32x256xbf16>
    %cst = arith.constant dense<0.000000e+00> : vector<8x256xf32>
    %10 = tpu.matmul %5, %9, %cst {dimension_numbers = #tpu.dot_dimension_numbers<[1], [0], [0], [1], [0, 0, 1, 1], [], []>} : vector<8x32xbf16>, vector<32x256xbf16>, vector<8x256xf32> -> vector<8x256xf32>
    %11 = arith.addf %7, %10 : vector<8x256xf32>
    %c0_9 = arith.constant 0 : index
    %c0_10 = arith.constant 0 : index
    %c0_11 = arith.constant 0 : index
    %12 = vector.load %arg6[%c0_9, %c0_10, %c0_11] : memref<3x8x256xf32, #tpu.memory_space<vmem>>, vector<1x8x256xf32>
    %13 = vector.shape_cast %12 : vector<1x8x256xf32> to vector<8x256xf32>
    %14 = vector.shape_cast %11 : vector<8x256xf32> to vector<1x8x256xf32>
    tpu.vector_store %arg6[%c0_9, %c0_10, %c0_11], %14 {strides = array<i32>} : memref<3x8x256xf32, #tpu.memory_space<vmem>>, vector<1x8x256xf32>,
    %c1 = arith.constant 1 : index
    %c0_12 = arith.constant 0 : index
    %c0_13 = arith.constant 0 : index
    %15 = vector.load %arg2[%c1, %c0_12, %c0_13] : memref<3x8x32xf32, #tpu.memory_space<vmem>>, vector<1x8x32xf32>
    %16 = vector.shape_cast %15 : vector<1x8x32xf32> to vector<8x32xf32>
    %17 = arith.truncf %16 : vector<8x32xf32> to vector<8x32xbf16>
    %c1_14 = arith.constant 1 : index
    %c0_15 = arith.constant 0 : index
    %c0_16 = arith.constant 0 : index
    %18 = vector.load %arg6[%c1_14, %c0_15, %c0_16] : memref<3x8x256xf32, #tpu.memory_space<vmem>>, vector<1x8x256xf32>
    %19 = vector.shape_cast %18 : vector<1x8x256xf32> to vector<8x256xf32>
    %c1_17 = arith.constant 1 : index
    %c0_18 = arith.constant 0 : index
    %c0_19 = arith.constant 0 : index
    %20 = vector.load %arg3[%c1_17, %c0_18, %c0_19] : memref<3x32x256xbf16, #tpu.memory_space<vmem>>, vector<1x32x256xbf16>
    %21 = vector.shape_cast %20 : vector<1x32x256xbf16> to vector<32x256xbf16>
    %cst_20 = arith.constant dense<0.000000e+00> : vector<8x256xf32>
    %22 = tpu.matmul %17, %21, %cst_20 {dimension_numbers = #tpu.dot_dimension_numbers<[1], [0], [0], [1], [0, 0, 1, 1], [], []>} : vector<8x32xbf16>, vector<32x256xbf16>, vector<8x256xf32> -> vector<8x256xf32>
    %23 = arith.addf %19, %22 : vector<8x256xf32>
    %c1_21 = arith.constant 1 : index
    %c0_22 = arith.constant 0 : index
    %c0_23 = arith.constant 0 : index
    %24 = vector.load %arg6[%c1_21, %c0_22, %c0_23] : memref<3x8x256xf32, #tpu.memory_space<vmem>>, vector<1x8x256xf32>
    %25 = vector.shape_cast %24 : vector<1x8x256xf32> to vector<8x256xf32>
    %26 = vector.shape_cast %23 : vector<8x256xf32> to vector<1x8x256xf32>
    tpu.vector_store %arg6[%c1_21, %c0_22, %c0_23], %26 {strides = array<i32>} : memref<3x8x256xf32, #tpu.memory_space<vmem>>, vector<1x8x256xf32>,
    %c2 = arith.constant 2 : index
    %c0_24 = arith.constant 0 : index
    %c0_25 = arith.constant 0 : index
    %27 = vector.load %arg2[%c2, %c0_24, %c0_25] : memref<3x8x32xf32, #tpu.memory_space<vmem>>, vector<1x8x32xf32>
    %28 = vector.shape_cast %27 : vector<1x8x32xf32> to vector<8x32xf32>
    %29 = arith.truncf %28 : vector<8x32xf32> to vector<8x32xbf16>
    %c2_26 = arith.constant 2 : index
    %c0_27 = arith.constant 0 : index
    %c0_28 = arith.constant 0 : index
    %30 = vector.load %arg6[%c2_26, %c0_27, %c0_28] : memref<3x8x256xf32, #tpu.memory_space<vmem>>, vector<1x8x256xf32>
    %31 = vector.shape_cast %30 : vector<1x8x256xf32> to vector<8x256xf32>
    %c2_29 = arith.constant 2 : index
    %c0_30 = arith.constant 0 : index
    %c0_31 = arith.constant 0 : index
    %32 = vector.load %arg3[%c2_29, %c0_30, %c0_31] : memref<3x32x256xbf16, #tpu.memory_space<vmem>>, vector<1x32x256xbf16>
    %33 = vector.shape_cast %32 : vector<1x32x256xbf16> to vector<32x256xbf16>
    %cst_32 = arith.constant dense<0.000000e+00> : vector<8x256xf32>
    %34 = tpu.matmul %29, %33, %cst_32 {dimension_numbers = #tpu.dot_dimension_numbers<[1], [0], [0], [1], [0, 0, 1, 1], [], []>} : vector<8x32xbf16>, vector<32x256xbf16>, vector<8x256xf32> -> vector<8x256xf32>
    %35 = arith.addf %31, %34 : vector<8x256xf32>
    %c2_33 = arith.constant 2 : index
    %c0_34 = arith.constant 0 : index
    %c0_35 = arith.constant 0 : index
    %36 = vector.load %arg6[%c2_33, %c0_34, %c0_35] : memref<3x8x256xf32, #tpu.memory_space<vmem>>, vector<1x8x256xf32>
    %37 = vector.shape_cast %36 : vector<1x8x256xf32> to vector<8x256xf32>
    %38 = vector.shape_cast %35 : vector<8x256xf32> to vector<1x8x256xf32>
    tpu.vector_store %arg6[%c2_33, %c0_34, %c0_35], %38 {strides = array<i32>} : memref<3x8x256xf32, #tpu.memory_space<vmem>>, vector<1x8x256xf32>,
    %c0_i32_36 = arith.constant 0 : i32
    %39 = arith.cmpi eq, %arg1, %c0_i32_36 : i32
    %40 = arith.extui %39 : i1 to i32
    %c0_i32_37 = arith.constant 0 : i32
    %41 = arith.cmpi ne, %40, %c0_i32_37 : i32
    scf.if %41 {
      %cst_38 = arith.constant 0.000000e+00 : f32
      %42 = vector.broadcast %cst_38 : f32 to vector<8x128xf32>
      %c0_39 = arith.constant 0 : index
      %c0_40 = arith.constant 0 : index
      %c0_41 = arith.constant 0 : index
      %43 = vector.load %arg6[%c0_39, %c0_40, %c0_41] : memref<3x8x256xf32, #tpu.memory_space<vmem>>, vector<1x8x256xf32>
      %44 = vector.shape_cast %43 : vector<1x8x256xf32> to vector<8x256xf32>
      %c0_42 = arith.constant 0 : index
      %c0_43 = arith.constant 0 : index
      %c0_44 = arith.constant 0 : index
      %45 = vector.load %arg4[%c0_42, %c0_43, %c0_44] : memref<3x1x256xf32, #tpu.memory_space<vmem>>, vector<1x1x256xf32>
      %46 = vector.shape_cast %45 : vector<1x1x256xf32> to vector<1x256xf32>
      %47 = vector.broadcast %46 : vector<1x256xf32> to vector<8x256xf32>
      %48 = arith.addf %44, %47 : vector<8x256xf32>
      %49 = vector.extract_strided_slice %48 {offsets = [0, 0], sizes = [8, 128], strides = [1, 1]} : vector<8x256xf32> to vector<8x128xf32>
      %50 = math.tanh %49 : vector<8x128xf32>
      %51 = vector.extract_strided_slice %48 {offsets = [0, 128], sizes = [8, 128], strides = [1, 1]} : vector<8x256xf32> to vector<8x128xf32>
      %52 = arith.negf %51 : vector<8x128xf32>
      %53 = math.exp %52 : vector<8x128xf32>
      %cst_45 = arith.constant 1.000000e+00 : f32
      %54 = vector.broadcast %cst_45 : f32 to vector<8x128xf32>
      %55 = arith.addf %54, %53 : vector<8x128xf32>
      %56 = arith.divf %54, %55 : vector<8x128xf32>
      %57 = arith.mulf %50, %56 : vector<8x128xf32>
      %58 = arith.addf %42, %57 : vector<8x128xf32>
      %c1_46 = arith.constant 1 : index
      %c0_47 = arith.constant 0 : index
      %c0_48 = arith.constant 0 : index
      %59 = vector.load %arg6[%c1_46, %c0_47, %c0_48] : memref<3x8x256xf32, #tpu.memory_space<vmem>>, vector<1x8x256xf32>
      %60 = vector.shape_cast %59 : vector<1x8x256xf32> to vector<8x256xf32>
      %c1_49 = arith.constant 1 : index
      %c0_50 = arith.constant 0 : index
      %c0_51 = arith.constant 0 : index
      %61 = vector.load %arg4[%c1_49, %c0_50, %c0_51] : memref<3x1x256xf32, #tpu.memory_space<vmem>>, vector<1x1x256xf32>
      %62 = vector.shape_cast %61 : vector<1x1x256xf32> to vector<1x256xf32>
      %63 = vector.broadcast %62 : vector<1x256xf32> to vector<8x256xf32>
      %64 = arith.addf %60, %63 : vector<8x256xf32>
      %65 = vector.extract_strided_slice %64 {offsets = [0, 0], sizes = [8, 128], strides = [1, 1]} : vector<8x256xf32> to vector<8x128xf32>
      %66 = math.tanh %65 : vector<8x128xf32>
      %67 = vector.extract_strided_slice %64 {offsets = [0, 128], sizes = [8, 128], strides = [1, 1]} : vector<8x256xf32> to vector<8x128xf32>
      %68 = arith.negf %67 : vector<8x128xf32>
      %69 = math.exp %68 : vector<8x128xf32>
      %cst_52 = arith.constant 1.000000e+00 : f32
      %70 = vector.broadcast %cst_52 : f32 to vector<8x128xf32>
      %71 = arith.addf %70, %69 : vector<8x128xf32>
      %72 = arith.divf %70, %71 : vector<8x128xf32>
      %73 = arith.mulf %66, %72 : vector<8x128xf32>
      %74 = arith.addf %58, %73 : vector<8x128xf32>
      %c2_53 = arith.constant 2 : index
      %c0_54 = arith.constant 0 : index
      %c0_55 = arith.constant 0 : index
      %75 = vector.load %arg6[%c2_53, %c0_54, %c0_55] : memref<3x8x256xf32, #tpu.memory_space<vmem>>, vector<1x8x256xf32>
      %76 = vector.shape_cast %75 : vector<1x8x256xf32> to vector<8x256xf32>
      %c2_56 = arith.constant 2 : index
      %c0_57 = arith.constant 0 : index
      %c0_58 = arith.constant 0 : index
      %77 = vector.load %arg4[%c2_56, %c0_57, %c0_58] : memref<3x1x256xf32, #tpu.memory_space<vmem>>, vector<1x1x256xf32>
      %78 = vector.shape_cast %77 : vector<1x1x256xf32> to vector<1x256xf32>
      %79 = vector.broadcast %78 : vector<1x256xf32> to vector<8x256xf32>
      %80 = arith.addf %76, %79 : vector<8x256xf32>
      %81 = vector.extract_strided_slice %80 {offsets = [0, 0], sizes = [8, 128], strides = [1, 1]} : vector<8x256xf32> to vector<8x128xf32>
      %82 = math.tanh %81 : vector<8x128xf32>
      %83 = vector.extract_strided_slice %80 {offsets = [0, 128], sizes = [8, 128], strides = [1, 1]} : vector<8x256xf32> to vector<8x128xf32>
      %84 = arith.negf %83 : vector<8x128xf32>
      %85 = math.exp %84 : vector<8x128xf32>
      %cst_59 = arith.constant 1.000000e+00 : f32
      %86 = vector.broadcast %cst_59 : f32 to vector<8x128xf32>
      %87 = arith.addf %86, %85 : vector<8x128xf32>
      %88 = arith.divf %86, %87 : vector<8x128xf32>
      %89 = arith.mulf %82, %88 : vector<8x128xf32>
      %90 = arith.addf %74, %89 : vector<8x128xf32>
      %c0_60 = arith.constant 0 : index
      %c0_61 = arith.constant 0 : index
      %91 = vector.load %arg5[%c0_60, %c0_61] : memref<8x128xf32, #tpu.memory_space<vmem>>, vector<8x128xf32>
      tpu.vector_store %arg5[%c0_60, %c0_61], %90 {strides = array<i32>} : memref<8x128xf32, #tpu.memory_space<vmem>>, vector<8x128xf32>,
    } else {
    }
    return
  }
  func.func @transform_0(%arg0: i32, %arg1: i32) -> (i32, i32, i32) {
    %c0_i32 = arith.constant 0 : i32
    %c0_i32_0 = arith.constant 0 : i32
    %c0_i32_1 = arith.constant 0 : i32
    return %c0_i32, %c0_i32_0, %arg1 : i32, i32, i32
  }
  func.func @transform_1(%arg0: i32, %arg1: i32) -> (i32, i32, i32) {
    %c0_i32 = arith.constant 0 : i32
    %c0_i32_0 = arith.constant 0 : i32
    return %c0_i32, %arg1, %arg0 : i32, i32, i32
  }
  func.func @transform_2(%arg0: i32, %arg1: i32) -> (i32, i32, i32) {
    %c0_i32 = arith.constant 0 : i32
    %c0_i32_0 = arith.constant 0 : i32
    %c0_i32_1 = arith.constant 0 : i32
    return %c0_i32, %c0_i32_0, %arg0 : i32, i32, i32
  }
  func.func @transform_3(%arg0: i32, %arg1: i32) -> (i32, i32) {
    %c0_i32 = arith.constant 0 : i32
    %c0_i32_0 = arith.constant 0 : i32
    return %c0_i32, %arg0 : i32, i32
  }
}

</mosaic_0001>

<bundles_post_ra>
// kernel: tpu_custom_call.1
= control target key start
LH: loop header
LB: loop body
LE: loop exit
PB: predicated region body
PF: predicated region fallthrough
CT: control target
= control target key end

     0   :  { %8 = vsyncpa [#allocation4], 0  ;;  %s591_s0 = inlined_call_operand.hbm [shape: f32[3,8,32], index: 0, kind: input, shape index: {}]   ;;  %s592_s1 = inlined_call_operand.hbm [shape: bf16[3,32,256], index: 1, kind: input, shape index: {}]   ;;  %s593_s2 = inlined_call_operand.vmem [shape: f32[3,1,256], index: 2, kind: input, shape index: {}]   ;;  %s594_s3 = inlined_call_operand.hbm [shape: f32[8,128], index: 3, kind: output, shape index: {}]  }
   0x1   :  { %9 = vsyncpa [#allocation7], 0 }
   0x2   :  { %10 = vsyncpa [#allocation5], 0  ;;  %s520_s12 = smov [#allocation3]   ;;  %s448_s16 = scalar_lea.hbm %s591_s0, 384 }
   0x3   :  { %s16_s13 = sshll.u32 %s520_s12, 4  ;;  %p449_p0 = scmp.ne.s32.totalorder %s591_s0, %s448_s16  ;;  %s17_s13 = int_to_ptr.vmem [resolvable:$true] %s16_s13 }
   0x4   :  { %p452_p1 = scmp.lt.u32.totalorder %s448_s16, %s591_s0 }
   0x6   :  { %p454_p2 = pnand %p452_p1, %p449_p0 }
   0x8   :  { %457 = shalt.err (!%p454_p2)
}
   0x9   :  { %s458_s21 = scalar_lea.vmem %s17_s13, 384  ;;  %p463_p4 = scmp.lt.s32.totalorder %s17_s13, %s17_s13 }
   0xa   :  { %p459_p3 = scmp.ne.s32.totalorder %s17_s13, %s458_s21  ;;  %p464_p5 = scmp.lt.s32.totalorder %s458_s21, %s458_s21 }
   0xc   :  { %p465_p6 = por %p464_p5, %p463_p4 }
   0xe   :  { %p466_p7 = pnand %p465_p6, %p459_p3 }
  0x10   :  { %469 = shalt.err (!%p466_p7)
}
  0x11   :  { %s521_s22 = smov 128   ;;  %s522_s23 = smov 8  }
  0x12   :  { %22 = dma.hbm_to_vmem [thread:$0]  %s591_s0, 384, %s17_s13, [#allocation4], %s521_s22, %s521_s22, %s522_s23  }
  0x13   :  { %s523_s26 = smov [#allocation6]   ;;  %s470_s30 = scalar_lea.hbm %s592_s1, 1536 }
  0x14   :  { %s28_s27 = sshll.u32 %s523_s26, 4  ;;  %p471_p8 = scmp.ne.s32.totalorder %s592_s1, %s470_s30  ;;  %s29_s27 = int_to_ptr.vmem [resolvable:$true] %s28_s27 }
  0x15   :  { %p474_p9 = scmp.lt.u32.totalorder %s470_s30, %s592_s1 }
  0x17   :  { %p476_p10 = pnand %p474_p9, %p471_p8 }
  0x19   :  { %479 = shalt.err (!%p476_p10)
}
  0x1a   :  { %s480_s8 = scalar_lea.vmem %s29_s27, 1536  ;;  %p485_p12 = scmp.lt.s32.totalorder %s29_s27, %s29_s27 }
  0x1b   :  { %p481_p11 = scmp.ne.s32.totalorder %s29_s27, %s480_s8  ;;  %p486_p13 = scmp.lt.s32.totalorder %s480_s8, %s480_s8 }
  0x1d   :  { %p487_p0 = por %p486_p13, %p485_p12 }
  0x1f   :  { %p488_p1 = pnand %p487_p0, %p481_p11 }
  0x21   :  { %491 = shalt.err (!%p488_p1)
}
  0x22   :  { %34 = dma.hbm_to_vmem [thread:$0]  %s592_s1, 1536, %s29_s27, [#allocation7], %s521_s22, %s521_s22, %s522_s23  }
  0x23   :  { %514 = dma.done.wait [#allocation4], 384  }
  0x24   :  { %515 = vsyncadd [#allocation4], 4294966912 }
  0x25   :  { %516 = dma.done.wait [#allocation7], 1536  }
  0x26   :  { %517 = vsyncadd [#allocation7], 4294965760  ;;  %v524_v0 = vmov 0   ;;  %v412_v1 = vld [vmem:[#allocation6 + $0x4] ss:$8 sps:$4 sm:$0xff]   ;;  %v132_v10 = vld [vmem:[#allocation3 + $0x8] sm:$0xff]  ;;  %v296_v19 = vlaneseq }
  0x27   :  { %118 = vmatprep.mubr.bf16.mxu0 %v524_v0  ;;  %197 = vmatprep.mubr.bf16.mxu1 %v524_v0  ;;  %v414_v2 = vld [vmem:[#allocation6 + $0x24] ss:$8 sps:$4 sm:$0xff]   ;;  %v416_v3 = vld [vmem:[#allocation6] ss:$8 sps:$4 sm:$0xff]   ;;  %v418_v5 = vld [vmem:[#allocation6 + $0x14] ss:$8 sps:$4 sm:$0xff]   ;;  %v133_v12 = vpack.c.bf16 %v132_v10, %v132_v10 }
  0x28   :  { %86 = vmatprep.subr.bf16.mxu0 %v412_v1  ;;  %v417_v4 = vld [vmem:[#allocation6 + $0x20] ss:$8 sps:$4 sm:$0xff]   ;;  %165 = vmatprep.subr.bf16.mxu1 %v414_v2  ;;  %v420_v6 = vld [vmem:[#allocation6 + $0x34] ss:$8 sps:$4 sm:$0xff]   ;;  %v422_v7 = vld [vmem:[#allocation6 + $0x10] ss:$8 sps:$4 sm:$0xff]  }
  0x29   :  { %87 = vmatpush1.bf16.msra.mxu0 %v416_v3  ;;  %166 = vmatpush1.bf16.msra.mxu1 %v417_v4  ;;  %v423_v8 = vld [vmem:[#allocation6 + $0x30] ss:$8 sps:$4 sm:$0xff]   ;;  %v54_v9 = vld [vmem:[#allocation3] sm:$0xff]  ;;  %vm82_vm0 = vcmask 261120   ;;  %v429_v15 = vld [vmem:[#allocation6 + $0x54] ss:$8 sps:$4 sm:$0xff]  }
  0x2a   :  { %88 = vmatprep.subr.bf16.mxu0 %v418_v5  ;;  %167 = vmatprep.subr.bf16.mxu1 %v420_v6  ;;  %v55_v11 = vpack.c.bf16 %v54_v9, %v54_v9  ;;  %v426_v13 = vld [vmem:[#allocation6 + $0x44] ss:$8 sps:$4 sm:$0xff]   ;;  %v424_v14 = vld [vmem:[#allocation6 + $0x40] ss:$8 sps:$4 sm:$0xff]   ;;  %v427_v16 = vld [vmem:[#allocation6 + $0x50] ss:$8 sps:$4 sm:$0xff]  }
  0x2b   :  { %v211_v17 = vld [vmem:[#allocation3 + $0x10] sm:$0xff]  ;;  %v297_v20 = vshrl.u32 %v296_v19, 7  ;;  %v294_v22 = vld [vmem:[%s593_s2] sm:$0x3]  ;;  %v402_v23 = vld [vmem:[%s593_s2 + $0x2] sm:$0x3] }
  0x2c   :  { %v212_v18 = vpack.c.bf16 %v211_v17, %v211_v17  ;;  %v404_v36 = vld [vmem:[%s593_s2 + $0x4] sm:$0x3]  ;;  %s525_s2 = smov [#allocation8]  }
  0x2d   :  { %89 = vmatpush1.bf16.msra.mxu0 %v422_v7  ;;  %168 = vmatpush1.bf16.msra.mxu1 %v423_v8  ;;  %v302_v21 = vsub.s32 1, %v297_v20  ;;  %v298_v39 = vsub.s32 0, %v297_v20  ;;  %s376_s15 = sshll.u32 %s525_s2, 4  ;;  %s377_s15 = int_to_ptr.vmem [resolvable:$true] %s376_s15 }
  0x2e   :  { %244 = vmatprep.subr.bf16.mxu0 %v426_v13  ;;  %s492_s16 = scalar_lea.vmem %s377_s15, 128  ;;  %p497_p3 = scmp.lt.s32.totalorder %s377_s15, %s377_s15 }
  0x2f   :  { %v303_v24 = vrot.slane %v294_v22, %v302_v21  ;;  %v329_v25 = vrot.slane %v402_v23, %v302_v21  ;;  %v355_v40 = vrot.slane %v404_v36, %v302_v21  ;;  %v299_v42 = vrot.slane %v294_v22, %v298_v39  ;;  %p493_p2 = scmp.ne.s32.totalorder %s377_s15, %s492_s16  ;;  %p498_p4 = scmp.lt.s32.totalorder %s492_s16, %s492_s16 }
  0x30   :  { %390 = vmatmul.mubr.msk.bf16.vlgmr.msra.gmra.mrb[0].mxu0 %vm82_vm0, %v55_v11  ;;  %395 = vmatmul.mubr.msk.bf16.vlgmr.msra.gmra.mrb[0].mxu1 %vm82_vm0, %v133_v12  ;;  %v325_v44 = vrot.slane %v402_v23, %v298_v39  ;;  %v351_v55 = vrot.slane %v404_v36, %v298_v39 }
  0x31   :  { %245 = vmatpush1.bf16.msra.mxu0 %v424_v14  ;;  %276 = vmatprep.mubr.bf16.mxu0 %v524_v0  ;;  %p499_p5 = por %p498_p4, %p497_p3 }
  0x32   :  { %246 = vmatprep.subr.bf16.mxu0 %v429_v15 }
  0x33   :  { %p500_p6 = pnand %p499_p5, %p493_p2 }
  0x35   :  { %247 = vmatpush1.bf16.msra.mxu0 %v427_v16 }
  0x38   :  { %400 = vmatmul.mubr.msk.bf16.vlgmr.msra.gmra.mrb[4].mxu0 %vm82_vm0, %v212_v18 }
 0x103   :  { %v120_v26 = vpop.f32.mrb[0].mxu0  ;;  %v199_v27 = vpop.f32.mrb[0].mxu1 }
 0x104   :  { %v122_v28 = vpop.f32.mrb[1].mxu0  ;;  %v201_v29 = vpop.f32.mrb[1].mxu1  ;;  %v306_v49 = vadd.f32 %v299_v42, %v120_v26  ;;  %v332_v50 = vadd.f32 %v325_v44, %v199_v27 }
 0x105   :  { %v307_v30 = vadd.f32 %v303_v24, %v122_v28  ;;  %v333_v31 = vadd.f32 %v329_v25, %v201_v29  ;;  %v124_v32 = vpop.f32.mrb[2].mxu0  ;;  %v203_v33 = vpop.f32.mrb[2].mxu1 }
 0x106   :  { %v125_v34 = vpop.f32.mrb[3].mxu0  ;;  %v204_v35 = vpop.f32.mrb[3].mxu1 }
 0x107   :  { %v401_v37 = vmul.f32 -1.442695, %v307_v30  ;;  %v403_v38 = vmul.f32 -1.442695, %v333_v31 }
 0x109   :  { %430 = vpow2.f32 %v401_v37 }
 0x10a   :  { %432 = vpow2.f32 %v403_v38 }
 0x10b   :  { %v278_v41 = vpop.f32.mrb[4].mxu0 }
 0x10c   :  { %v280_v43 = vpop.f32.mrb[5].mxu0  ;;  %v358_v56 = vadd.f32 %v351_v55, %v278_v41 }
 0x10d   :  { %v359_v45 = vadd.f32 %v355_v40, %v280_v43  ;;  %v282_v46 = vpop.f32.mrb[6].mxu0 }
 0x10e   :  { %v283_v47 = vpop.f32.mrb[7].mxu0 }
 0x10f   :  { %v405_v48 = vmul.f32 -1.442695, %v359_v45 }
 0x111   :  { %434 = vpow2.f32 %v405_v48 }
 0x112   :  { %436 = vtanh.f32 %v306_v49 }
 0x113   :  { %v431_v51 = vpop.eup %430  ;;  %438 = vtanh.f32 %v332_v50 }
 0x114   :  { %v433_v52 = vpop.eup %432  ;;  %v312_v53 = vadd.f32 1.0, %v431_v51 }
 0x115   :  { %v338_v54 = vadd.f32 1.0, %v433_v52 }
 0x116   :  { %440 = vrcp.f32 %v312_v53 }
 0x117   :  { %442 = vrcp.f32 %v338_v54 }
 0x118   :  { %444 = vtanh.f32 %v358_v56 }
 0x11b   :  { %v435_v57 = vpop.eup %434 }
 0x11c   :  { %v364_v58 = vadd.f32 1.0, %v435_v57  ;;  %v437_v59 = vpop.eup %436 }
 0x11d   :  { %v439_v60 = vpop.eup %438 }
 0x11e   :  { %446 = vrcp.f32 %v364_v58 }
 0x120   :  { %v441_v61 = vpop.eup %440 }
 0x121   :  { %v443_v62 = vpop.eup %442  ;;  %v315_v63 = vmul.f32 %v441_v61, %v437_v59 }
 0x122   :  { %v341_v0 = vmul.f32 %v443_v62, %v439_v60  ;;  %v445_v2 = vpop.eup %444 }
 0x124   :  { %v342_v1 = vadd.f32 %v341_v0, %v315_v63 }
 0x128   :  { %v447_v3 = vpop.eup %446 }
 0x129   :  { %v367_v4 = vmul.f32 %v447_v3, %v445_v2 }
 0x12b   :  { %v368_v5 = vadd.f32 %v367_v4, %v342_v1 }
 0x12d   :  { %369 = vst [vmem:[#allocation8] sm:$0xff] %v368_v5 }
 0x12e   :  { %503 = shalt.err (!%p500_p6)
}
 0x12f   :  { %s504_s19 = scalar_lea.hbm %s594_s3, 128 }
 0x130   :  { %p505_p7 = scmp.ne.s32.totalorder %s594_s3, %s504_s19  ;;  %p508_p8 = scmp.lt.u32.totalorder %s504_s19, %s594_s3 }
 0x132   :  { %p510_p9 = pnand %p508_p8, %p505_p7 }
 0x134   :  { %513 = shalt.err (!%p510_p9)
}
 0x135   :  { %379 = dma.vmem_to_hbm [thread:$0]  %s377_s15, 128, %s594_s3, [#allocation5]  }
 0x136   :  { %518 = dma.done.wait [#allocation5], 128  }
 0x137   :  { %519 = vsyncadd [#allocation5], 4294967168 }
 0x138   :  { %383 = vsyncpa [#allocation4], 1 }
 0x139   :  { %384 = vsyncpa [#allocation7], 1 }
 0x13a   :  { %385 = vsyncpa [#allocation5], 1 }

</bundles_post_ra>
